<compile_context>
chip_gen: v6e
topology: v6e:2x2x1
jax: 0.10.0
libtpu: 0.0.40
codegen_flags: <defaults>
</compile_context>

<pallas_src>
import jax
import jax.numpy as jnp
from jax.experimental import pallas as pl
from jax.experimental.pallas import tpu as pltpu


# ----------------------------------------------------------------------------- kernels
def _quad_kernel_acc(x_ref, w_ref, o_ref, acc_ref):
    # x_ref: (tm, tk) input tile; w_ref: (2*tk, tn) stacked [W0^T ; W1^T] tile
    # o_ref: (tm, tn) output tile; acc_ref: (tm, tn) f32 accumulator scratch
    @pl.when(pl.program_id(2) == 0)
    def _init():
        acc_ref[...] = jnp.zeros_like(acc_ref)

    x = x_ref[...]
    lhs = jnp.concatenate([x * x, x], axis=-1).astype(w_ref.dtype)  # (tm, 2*tk)
    acc_ref[...] += jnp.dot(lhs, w_ref[...], preferred_element_type=jnp.float32)

    @pl.when(pl.program_id(2) == pl.num_programs(2) - 1)
    def _finish():
        o_ref[...] = acc_ref[...].astype(o_ref.dtype)


def _quad_kernel_acc_bias(x_ref, w_ref, b_ref, o_ref, acc_ref):
    @pl.when(pl.program_id(2) == 0)
    def _init():
        acc_ref[...] = jnp.zeros_like(acc_ref)

    x = x_ref[...]
    lhs = jnp.concatenate([x * x, x], axis=-1).astype(w_ref.dtype)
    acc_ref[...] += jnp.dot(lhs, w_ref[...], preferred_element_type=jnp.float32)

    @pl.when(pl.program_id(2) == pl.num_programs(2) - 1)
    def _finish():
        o_ref[...] = (acc_ref[...] + b_ref[...]).astype(o_ref.dtype)


def _quad_kernel_single(x_ref, w_ref, o_ref):
    # Single-K-step fast path: no accumulator scratch, direct write.
    x = x_ref[...]
    lhs = jnp.concatenate([x * x, x], axis=-1).astype(w_ref.dtype)
    o_ref[...] = jnp.dot(lhs, w_ref[...],
                         preferred_element_type=jnp.float32).astype(o_ref.dtype)


def _quad_kernel_single_bias(x_ref, w_ref, b_ref, o_ref):
    x = x_ref[...]
    lhs = jnp.concatenate([x * x, x], axis=-1).astype(w_ref.dtype)
    acc = jnp.dot(lhs, w_ref[...], preferred_element_type=jnp.float32)
    o_ref[...] = (acc + b_ref[...]).astype(o_ref.dtype)


# ----------------------------------------------------------------------------- helpers
def _round_up(v, m):
    return (v + m - 1) // m * m


def prepare_quadratic_params(weight, bias=None, *, tn=256, tk=512, use_bf16=False):
    """One-time weight prep (hoist out of the per-call path).

    weight: (2, out_features, in_features); bias: (out_features,) or None.
    Returns a dict with the stacked/padded weight and tiling metadata.
    """
    assert weight.ndim == 3 and weight.shape[0] == 2
    out_features, in_features = weight.shape[1], weight.shape[2]

    # Lane-dense tiles: IN/OUT always padded to multiples of 128.
    tk_eff = min(tk, _round_up(in_features, 128))
    tn_eff = min(tn, _round_up(out_features, 128))
    in_p = _round_up(in_features, tk_eff)
    out_p = _round_up(out_features, tn_eff)
    nk = in_p // tk_eff

    w0t = jnp.transpose(weight[0])  # (IN, OUT) -> lane-dense MXU RHS
    w1t = jnp.transpose(weight[1])
    pad_w = ((0, in_p - in_features), (0, out_p - out_features))
    w0t = jnp.pad(w0t, pad_w)
    w1t = jnp.pad(w1t, pad_w)
    if use_bf16:
        # bf16 MXU inputs, f32 accumulation (changes numerics vs f32 reference).
        w0t = w0t.astype(jnp.bfloat16)
        w1t = w1t.astype(jnp.bfloat16)

    # Interleave per K block so one (2*tk, tn) RHS tile = [w0t block ; w1t block];
    # it contracts against the in-kernel lane-concat LHS [x*x | x].
    w_stacked = jnp.concatenate(
        [w0t.reshape(nk, tk_eff, out_p), w1t.reshape(nk, tk_eff, out_p)], axis=1
    ).reshape(2 * in_p, out_p)

    b = None
    if bias is not None:
        b = jnp.pad(bias.astype(jnp.float32),
                    (0, out_p - out_features)).reshape(1, out_p)

    return dict(w_stacked=w_stacked, bias=b,
                in_features=in_features, out_features=out_features,
                in_p=in_p, out_p=out_p, tk_eff=tk_eff, tn_eff=tn_eff, nk=nk)


def quadratic_apply(x, params, *, tm=256):
    """x: (B, in_features). Applies the prepared Quadratic layer."""
    B, in_features = x.shape
    assert in_features == params["in_features"]
    out_features = params["out_features"]
    in_p, out_p = params["in_p"], params["out_p"]
    tk_eff, tn_eff, nk = params["tk_eff"], params["tn_eff"], params["nk"]
    w_stacked, bias = params["w_stacked"], params["bias"]
    out_dtype = x.dtype

    # ---- M tiling (rows); keep blocks (8,128)-legal.
    tm_eff = min(tm, _round_up(B, 8))
    # v7x megacore: if both parallel axes would have extent 1, split M in two.
    if (_round_up(B, tm_eff) // tm_eff == 1 and out_p // tn_eff == 1
            and tm_eff >= 16 and tm_eff % 16 == 0):
        tm_eff //= 2
    B_p = _round_up(B, tm_eff)

    if B_p != B or in_p != in_features:
        x = jnp.pad(x, ((0, B_p - B), (0, in_p - in_features)))

    grid = (B_p // tm_eff, out_p // tn_eff, nk)

    in_specs = [
        pl.BlockSpec((tm_eff, tk_eff), lambda i, j, k: (i, k)),
        pl.BlockSpec((2 * tk_eff, tn_eff), lambda i, j, k: (k, j)),
    ]
    inputs = [x, w_stacked]
    if bias is not None:
        in_specs.append(pl.BlockSpec((1, tn_eff), lambda i, j, k: (0, j)))
        inputs.append(bias)

    if nk == 1:
        kernel = _quad_kernel_single_bias if bias is not None else _quad_kernel_single
        scratch_shapes = []
    else:
        kernel = _quad_kernel_acc_bias if bias is not None else _quad_kernel_acc
        scratch_shapes = [pltpu.VMEM((tm_eff, tn_eff), jnp.float32)]

    # ---- explicit VMEM budget (double-buffered tiles + scratch + concat temp)
    x_item = jnp.dtype(x.dtype).itemsize
    w_item = jnp.dtype(w_stacked.dtype).itemsize
    o_item = jnp.dtype(out_dtype).itemsize
    vmem_bytes = (
        2 * tm_eff * tk_eff * x_item                 # x tile, double-buffered
        + 2 * 2 * tk_eff * tn_eff * w_item           # stacked weight tile, double-buffered
        + 2 * tm_eff * tn_eff * o_item               # output tile, double-buffered
        + (tm_eff * tn_eff * 4 if nk > 1 else 0)     # f32 accumulator scratch
        + (2 * 8 * tn_eff * 4 if bias is not None else 0)
        + tm_eff * 2 * tk_eff * 4                    # in-kernel [x*x | x] temp
    )
    # Cap at 48 MiB: safe on v7x (64 MiB total per TC) and plenty on v5e/v6e.
    vmem_limit = int(min(max(2 * vmem_bytes + (4 << 20), 16 << 20), 48 << 20))

    out_p_arr = pl.pallas_call(
        kernel,
        out_shape=jax.ShapeDtypeStruct((B_p, out_p), out_dtype),
        grid_spec=pltpu.PrefetchScalarGridSpec(
            num_scalar_prefetch=0,
            grid=grid,
            in_specs=in_specs,
            out_specs=pl.BlockSpec((tm_eff, tn_eff), lambda i, j, k: (i, j)),
            scratch_shapes=scratch_shapes,
        ),
        compiler_params=pltpu.CompilerParams(
            dimension_semantics=("parallel", "parallel", "arbitrary"),
            vmem_limit_bytes=vmem_limit,
        ),
    )(*inputs)

    return out_p_arr[:B, :out_features]


def quadratic_forward(x, weight, bias=None, *, tm=256, tn=256, tk=512,
                      use_bf16=False):
    """Convenience one-shot path (preps weights then applies)."""
    params = prepare_quadratic_params(weight, bias, tn=tn, tk=tk, use_bf16=use_bf16)
    return quadratic_apply(x, params, tm=tm)


# ----------------------------------------------------------------------------- init / reference
def xavier_normal(key, shape):
    # Replicates torch.nn.init.xavier_normal_ fan convention for a (2, out, in) tensor.
    receptive = 1
    for d in shape[2:]:
        receptive *= d
    fan_in = shape[1] * receptive
    fan_out = shape[0] * receptive
    std = (2.0 / (fan_in + fan_out)) ** 0.5
    return std * jax.random.normal(key, shape, dtype=jnp.float32)


def _reference(x, weight, bias=None):
    ref = (x ** 2) @ weight[0].T + x @ weight[1].T
    if bias is not None:
        ref = ref + bias
    return ref


if __name__ == "__main__":
    key = jax.random.PRNGKey(0)
    k_x1, k_w1, k_x2, k_w2, k_b2, k_x3 = jax.random.split(key, 6)

    # ---- test 1: module-default config (bias=False), small ILCM-ish shapes.
    #      Exercises the prepared-params path (prep once, apply twice) and the
    #      single-K-step fast kernel.
    B, IN, OUT = 16, 32, 32
    x1 = jax.random.normal(k_x1, (B, IN), dtype=jnp.float32)
    w1 = xavier_normal(k_w1, (2, OUT, IN))
    params1 = prepare_quadratic_params(w1, None)          # hoisted weight prep
    out1 = jax.block_until_ready(quadratic_apply(x1, params1))
    ref1 = _reference(x1, w1, None)
    assert out1.shape == (B, OUT)
    assert jnp.allclose(out1, ref1, atol=1e-5, rtol=1e-5), "test 1 mismatch"

    x1b = jax.random.normal(k_x3, (B, IN), dtype=jnp.float32)
    out1b = jax.block_until_ready(quadratic_apply(x1b, params1))  # reuse prep
    assert jnp.allclose(out1b, _reference(x1b, w1, None), atol=1e-5, rtol=1e-5), \
        "test 1b mismatch"

    # ---- test 2: bias=True, non-divisible shapes -> padding + M/N/K tiling,
    #      multi-step K accumulation path.
    B2, IN2, OUT2 = 200, 160, 192
    x2 = jax.random.normal(k_x2, (B2, IN2), dtype=jnp.float32)
    w2 = xavier_normal(k_w2, (2, OUT2, IN2))
    b2 = 0.01 * jax.random.normal(k_b2, (OUT2,), dtype=jnp.float32)
    out2 = jax.block_until_ready(
        quadratic_forward(x2, w2, b2, tm=128, tn=128, tk=128))
    ref2 = _reference(x2, w2, b2)
    assert out2.shape == (B2, OUT2)
    assert jnp.allclose(out2, ref2, atol=1e-3, rtol=1e-3), "test 2 mismatch"

    print("KERNEL_OK")
</pallas_src>

<mosaic_0001>
module attributes {stable_mosaic.version = 11 : i64} {
  func.func @_quad_kernel_single(%arg0: i32, %arg1: i32, %arg2: i32, %arg3: memref<8x128xf32, #tpu.memory_space<vmem>>, %arg4: memref<256x128xf32, #tpu.memory_space<vmem>>, %arg5: memref<8x128xf32, #tpu.memory_space<vmem>>) attributes {dimension_semantics = [#tpu.dimension_semantics<parallel>, #tpu.dimension_semantics<parallel>, #tpu.dimension_semantics<arbitrary>], iteration_bounds = array<i64: 2, 1, 1>, scalar_prefetch = 0 : i64, scratch_operands = 0 : i64, tpu.core_type = #tpu.core_type<tc>, window_params = [{transform_indices = @transform_0, window_bounds = array<i64: 8, 128>}, {transform_indices = @transform_1, window_bounds = array<i64: 256, 128>}, {transform_indices = @transform_2, window_bounds = array<i64: 8, 128>}]} {
    %c0 = arith.constant 0 : index
    %c0_0 = arith.constant 0 : index
    %0 = vector.load %arg3[%c0, %c0_0] : memref<8x128xf32, #tpu.memory_space<vmem>>, vector<8x128xf32>
    %1 = arith.mulf %0, %0 : vector<8x128xf32>
    %2 = tpu.concatenate %1, %0 in 1 : vector<8x128xf32>, vector<8x128xf32> -> vector<8x256xf32>
    %c0_1 = arith.constant 0 : index
    %c0_2 = arith.constant 0 : index
    %3 = vector.load %arg4[%c0_1, %c0_2] : memref<256x128xf32, #tpu.memory_space<vmem>>, vector<256x128xf32>
    %cst = arith.constant dense<0.000000e+00> : vector<8x128xf32>
    %4 = tpu.matmul %2, %3, %cst {dimension_numbers = #tpu.dot_dimension_numbers<[1], [0], [0], [1], [0, 0, 1, 1], [], []>} : vector<8x256xf32>, vector<256x128xf32>, vector<8x128xf32> -> vector<8x128xf32>
    %c0_3 = arith.constant 0 : index
    %c0_4 = arith.constant 0 : index
    %5 = vector.load %arg5[%c0_3, %c0_4] : memref<8x128xf32, #tpu.memory_space<vmem>>, vector<8x128xf32>
    tpu.vector_store %arg5[%c0_3, %c0_4], %4 {strides = array<i32>} : memref<8x128xf32, #tpu.memory_space<vmem>>, vector<8x128xf32>,
    return
  }
  func.func @transform_0(%arg0: i32, %arg1: i32, %arg2: i32) -> (i32, i32) {
    %c0_i32 = arith.constant 0 : i32
    return %arg0, %arg2 : i32, i32
  }
  func.func @transform_1(%arg0: i32, %arg1: i32, %arg2: i32) -> (i32, i32) {
    %c0_i32 = arith.constant 0 : i32
    return %arg2, %arg1 : i32, i32
  }
  func.func @transform_2(%arg0: i32, %arg1: i32, %arg2: i32) -> (i32, i32) {
    %c0_i32 = arith.constant 0 : i32
    return %arg0, %arg1 : i32, i32
  }
}

</mosaic_0001>

<bundles_post_ra>
// kernel: tpu_custom_call.1
= control target key start
LH: loop header
LB: loop body
LE: loop exit
PB: predicated region body
PF: predicated region fallthrough
CT: control target
= control target key end

     0   :  { %7 = vsyncpa [#allocation3], 0  ;;  %s883_s0 = inlined_call_operand.hbm [shape: f32[16,128], index: 0, kind: input, shape index: {}]   ;;  %s884_s1 = inlined_call_operand.hbm [shape: f32[256,128], index: 1, kind: input, shape index: {}]   ;;  %s885_s2 = inlined_call_operand.hbm [shape: f32[16,128], index: 2, kind: output, shape index: {}]  }
   0x1   :  { %9 = vsyncpa [#allocation3 + $0x1], 0 }
   0x2   :  { %10 = vsyncpa [#allocation6], 0 }
   0x3   :  { %11 = vsyncpa [#allocation4], 0 }
   0x4   :  { %13 = vsyncpa [#allocation4 + $0x1], 0  ;;  %s712_s9 = smov 0   ;;  %s714_s10 = smov 0  }
   0x5   :  { %s716_s11 = smov 0   ;;  %s718_s12 = smov 0  }
   0x6   :  { %s720_s13 = smov 0   ;;  %s722_s14 = smov 0  }
   0x7 LB: > { %s427_s15 = sadd.s32 4294967295, %s690_s14   ;;  %s428_s16 = sadd.s32 4294967294, %s690_s14   ;;  %s690_s14 = sphi %s722_s14, %s19_s14   ;;  %s686_s13 = sphi %s720_s13, %s903_s13   ;;  %s682_s12 = sphi %s718_s12, %s902_s12   ;;  %s678_s11 = sphi %s716_s11, %s901_s11   ;;  %s674_s10 = sphi %s714_s10, %s900_s10   ;;  %s670_s9 = sphi %s712_s9, %s899_s9  }
   0x8   : > { %p60_p0 = scmp.ne.s32.totalorder %s674_s10, %s670_s9  ;;  %p746_p1 = scmp.eq.s32.totalorder %s427_s15, 0 }
   0x9   : > { %p750_p2 = scmp.eq.s32.totalorder %s427_s15, 1  ;;  %p120_p3 = scmp.eq.s32.totalorder %s428_s16, 1 }
   0xa   : > { %p756_p4 = por %p746_p1, %p60_p0  ;;  %p429_p5 = scmp.ge.s32.totalorder %s690_s14, 1 }
   0xb   : > { %p761_p6 = por %p120_p3, %p60_p0  ;;  %p127_p7 = scmp.lt.s32.totalorder %s690_s14, 3 }
   0xc   : > { %s889_s19 = scalar_select %p756_p4, 1, 0 }
   0xd   : > { %s890_s20 = scalar_select %p761_p6, 1, 0 }
   0xe   : > { %p766_p8 = pnand %p429_p5, %p127_p7  ;;  %s692_s22 = smov [#allocation5]  }
   0xf   : > { %s143_s23 = sshll.u32 %s692_s22, 4  ;;  %s38_s25 = sadd.s32 1, %s686_s13  ;;  %s144_s23 = int_to_ptr.vmem [resolvable:$true] %s143_s23 }
  0x10   : > { %p485_p9 = pneg %p766_p8  ;;  %s563_s26 = scalar_lea.vmem %s144_s23, 4096 }
  0x11   : > { %p564_p13 = scmp.ne.s32.totalorder %s144_s23, %s563_s26  ;;  %p571_p5 = scmp.lt.s32.totalorder %s144_s23, %s144_s23 }
  0x12   : > { %p775_p11 = pnand %p485_p9, %p746_p1  ;;  %p572_p7 = scmp.lt.s32.totalorder %s563_s26, %s563_s26 }
  0x14   : > { %p554_p12 = pneg %p775_p11  ;;  %p573_p6 = por %p572_p7, %p571_p5 }
  0x16   : > { %p566_p0 = pnand %p564_p13, %p554_p12 }
  0x18   : > { %p567_p3 = pneg %p566_p0 }
  0x1a   : > { %p574_p4 = pnand %p573_p6, %p567_p3 }
  0x1c   : > { %577 = shalt.err (!%p574_p4)
}
  0x1d   : > { %s693_s27 = smov 128   ;;  %s694_s28 = smov 8  }
  0x1e   : > { %488 = dma.hbm_to_vmem [thread:$0]  (!%p775_p11), %s884_s1, 4096, %s144_s23, [#allocation6], %s693_s27, %s693_s27, %s694_s28  }
  0x1f   : > { %p40_p6 = scmp.ge.s32.totalorder %s38_s25, 2  ;;  %s47_s3 = sadd.s32 1, %s678_s11 }
  0x20   : > { %p54_p4 = scmp.ne.s32.totalorder %s678_s11, %s674_s10  ;;  %p55_p9 = scmp.eq.s32.totalorder %s690_s14, 0 }
  0x21   : > { %s905_s25 = smov (%p40_p6, %s38_s25), 0  ;;  %p498_p0 = scmp.lt.s32.totalorder %s690_s14, 2 }
  0x22   : > { %p793_p12 = por %p55_p9, %p54_p4  ;;  %p799_p13 = por %p750_p2, %p54_p4 }
  0x23   : > { %s42_s6 = ssub.s32 %s686_s13, %s905_s25  ;;  %s157_s7 = sand.u32 1, %s678_s11  }
  0x24   : > { %p45_p11 = scmp.eq.s32.totalorder %s42_s6, 0  ;;  %s432_s8 = sshll.u32 %s157_s7, 3 }
  0x25   : > { %s433_s16 = sshll.u32 %s686_s13, 7  ;;  %s161_s26 = scalar_lea.vmem [#allocation2], %s432_s8 }
  0x26   : > { %s808_s15 = scalar_select %p45_p11, %s678_s11, %s47_s3  }
  0x27   : > { %s167_s24 = scalar_lea.hbm %s883_s0, %s433_s16  ;;  %s169_s27 = sshll.u32 %s161_s26, 4  ;;  %s170_s27 = int_to_ptr.vmem [resolvable:$true] %s169_s27 }
  0x28   : > { %p816_p2 = pnand %p498_p0, %p793_p12  ;;  %s158_s28 = scalar_lea.sflag [#allocation3], %s157_s7 }
  0x29   : > { %s591_s29 = scalar_lea.vmem %s170_s27, 128  ;;  %s695_s30 = smov [#allocation2]  }
  0x2a   : > { %p580_p3 = pneg %p816_p2  ;;  %p592_p5 = scmp.ne.s32.totalorder %s170_s27, %s591_s29 }
  0x2b   : > { %s596_s3 = sshll.u32 %s695_s30, 4  ;;  %s597_s3 = int_to_ptr.vmem [resolvable:$false] %s596_s3 }
  0x2c   : > { %p594_p7 = pnand %p592_p5, %p580_p3  ;;  %s598_s6 = scalar_lea.vmem %s597_s3, 256 }
  0x2d   : > { %p599_p4 = scmp.lt.s32.totalorder %s170_s27, %s597_s3  ;;  %p600_p9 = scmp.lt.s32.totalorder %s598_s6, %s591_s29 }
  0x2e   : > { %p595_p6 = pneg %p594_p7 }
  0x2f   : > { %p601_p11 = por %p600_p9, %p599_p4 }
  0x31   : > { %p602_p10 = pnand %p601_p11, %p595_p6 }
  0x33   : > { %605 = shalt.err (!%p602_p10)
}
  0x34   : > { %492 = dma.hbm_to_vmem [thread:$0]  (!%p816_p2), %s167_s24, 128, %s170_s27, %s158_s28  }
  0x35   : > { %178 = sbr.rel (%p766_p8) target bundleno = 304 (0x130), region = 28  ;;  %s827_s4 = sand.u32 (!%p766_p8), 1, %s674_s10  }
  0x36   : > { %s435_s7 = sshll.u32 (!%p766_p8), %s827_s4, 3  ;;  %s181_s8 = scalar_lea.sflag (!%p766_p8), [#allocation3], %s827_s4 }
  0x37   : > { %s184_s16 = scalar_lea.vmem (!%p766_p8), [#allocation2], %s435_s7  ;;  %p896_p12 = scmp.ne.s32.totalorder (!%p766_p8), %s889_s19, 0 }
  0x3a   : > { %657 = dma.done.wait (%p896_p12), %s181_s8, 128  }
  0x3b   : > { %659 = vsyncadd (%p896_p12), %s181_s8, 4294967168 }
  0x3c   : > { %661 = dma.done.wait (%p746_p1), [#allocation6], 4096  }
  0x3d   : > { %663 = vsyncadd (%p746_p1), [#allocation6], 4294963200  ;;  %v243_v0 = vld [vmem:[#allocation5 + $0xf8] sm:$0xff]  ;;  %v242_v2 = vld [vmem:[#allocation5 + $0xf0] sm:$0xff]  ;;  %s439_s17 = sshll.u32 %s682_s12, 7  ;;  %s208_s19 = scalar_lea.vmem [#allocation7], %s435_s7 }
  0x3e   : > { %v227_v1 = vld [vmem:[#allocation5 + $0x78] sm:$0xff]  ;;  %442 = vmatprep.subr.mxu0 %v243_v0  ;;  %v226_v3 = vld [vmem:[#allocation5 + $0x70] sm:$0xff]  ;;  %v241_v4 = vld [vmem:[#allocation5 + $0xe8] sm:$0xff]  ;;  %s330_s21 = sshll.u32 %s208_s19, 4  ;;  %s328_s24 = scalar_lea.hbm %s885_s2, %s439_s17  ;;  %s331_s21 = int_to_ptr.vmem [resolvable:$true] %s330_s21 }
  0x3f   : > { %443 = vmatpush3.msra.mxu0 %v227_v1  ;;  %v225_v5 = vld [vmem:[#allocation5 + $0x68] sm:$0xff]  ;;  %v240_v6 = vld [vmem:[#allocation5 + $0xe0] sm:$0xff]  ;;  %v239_v8 = vld [vmem:[#allocation5 + $0xd8] sm:$0xff]  ;;  %s316_s26 = scalar_lea.sflag [#allocation4], %s827_s4  ;;  %s606_s27 = scalar_lea.vmem %s331_s21, 128 }
  0x40   : > { %444 = vmatprep.subr.mxu0 %v242_v2  ;;  %v224_v7 = vld [vmem:[#allocation5 + $0x60] sm:$0xff]  ;;  %v223_v9 = vld [vmem:[#allocation5 + $0x58] sm:$0xff]  ;;  %v238_v10 = vld [vmem:[#allocation5 + $0xd0] sm:$0xff]  ;;  %p607_p1 = scmp.ne.s32.totalorder %s331_s21, %s606_s27  ;;  %s696_s18 = smov [#allocation7]  }
  0x41   : > { %445 = vmatpush3.msra.mxu0 %v226_v3  ;;  %v222_v11 = vld [vmem:[#allocation5 + $0x50] sm:$0xff]  ;;  %v237_v12 = vld [vmem:[#allocation5 + $0xc8] sm:$0xff]  ;;  %v236_v15 = vld [vmem:[#allocation5 + $0xc0] sm:$0xff]  ;;  %s610_s28 = sshll.u32 %s696_s18, 4  ;;  %s611_s28 = int_to_ptr.vmem [resolvable:$false] %s610_s28 }
  0x42   : > { %446 = vmatprep.subr.mxu0 %v241_v4  ;;  %v210_v13 = vld [vmem:[%s184_s16] sm:$0xff]  ;;  %v221_v14 = vld [vmem:[#allocation5 + $0x48] sm:$0xff]  ;;  %v220_v16 = vld [vmem:[#allocation5 + $0x40] sm:$0xff]  ;;  %p608_p8 = pnand %p607_p1, %p799_p13  ;;  %s612_s12 = scalar_lea.vmem %s611_s28, 256 }
  0x43   : > { %447 = vmatpush3.msra.mxu0 %v225_v5  ;;  %308 = vmatprep.mubr.f32.mxu0 %v210_v13  ;;  %v235_v17 = vld [vmem:[#allocation5 + $0xb8] sm:$0xff]  ;;  %v234_v19 = vld [vmem:[#allocation5 + $0xb0] sm:$0xff]  ;;  %v233_v21 = vld [vmem:[#allocation5 + $0xa8] sm:$0xff]  ;;  %v211_v33 = vmul.f32 %v210_v13, %v210_v13  ;;  %p613_p0 = scmp.lt.s32.totalorder %s331_s21, %s611_s28  ;;  %p614_p2 = scmp.lt.s32.totalorder %s612_s12, %s606_s27 }
  0x44   : > { %448 = vmatprep.subr.mxu0 %v240_v6  ;;  %v219_v18 = vld [vmem:[#allocation5 + $0x38] sm:$0xff]  ;;  %v218_v20 = vld [vmem:[#allocation5 + $0x30] sm:$0xff]  ;;  %v217_v22 = vld [vmem:[#allocation5 + $0x28] sm:$0xff]  ;;  %p609_p10 = pneg %p608_p8 }
  0x45   : > { %449 = vmatpush3.msra.mxu0 %v224_v7  ;;  %v232_v23 = vld [vmem:[#allocation5 + $0xa0] sm:$0xff]  ;;  %v231_v25 = vld [vmem:[#allocation5 + $0x98] sm:$0xff]  ;;  %v230_v27 = vld [vmem:[#allocation5 + $0x90] sm:$0xff]  ;;  %p615_p3 = por %p614_p2, %p613_p0 }
  0x46   : > { %450 = vmatprep.subr.mxu0 %v239_v8  ;;  %v216_v24 = vld [vmem:[#allocation5 + $0x20] sm:$0xff]  ;;  %v215_v26 = vld [vmem:[#allocation5 + $0x18] sm:$0xff]  ;;  %v214_v28 = vld [vmem:[#allocation5 + $0x10] sm:$0xff] }
  0x47   : > { %451 = vmatpush3.msra.mxu0 %v223_v9  ;;  %v229_v29 = vld [vmem:[#allocation5 + $0x88] sm:$0xff]  ;;  %v228_v31 = vld [vmem:[#allocation5 + $0x80] sm:$0xff]  ;;  %p616_p5 = pnand %p615_p3, %p609_p10 }
  0x48   : > { %452 = vmatprep.subr.mxu0 %v238_v10  ;;  %v213_v30 = vld [vmem:[#allocation5 + $0x8] sm:$0xff]  ;;  %v212_v32 = vld [vmem:[#allocation5] sm:$0xff] }
  0x49   : > { %453 = vmatpush3.msra.mxu0 %v222_v11 }
  0x4a   : > { %454 = vmatprep.subr.mxu0 %v237_v12 }
  0x4b   : > { %455 = vmatpush3.msra.mxu0 %v221_v14 }
  0x4c   : > { %456 = vmatprep.subr.mxu0 %v236_v15 }
  0x4d   : > { %457 = vmatpush3.msra.mxu0 %v220_v16 }
  0x4e   : > { %458 = vmatprep.subr.mxu0 %v235_v17 }
  0x4f   : > { %459 = vmatpush3.msra.mxu0 %v219_v18 }
  0x50   : > { %460 = vmatprep.subr.mxu0 %v234_v19 }
  0x51   : > { %461 = vmatpush3.msra.mxu0 %v218_v20 }
  0x52   : > { %462 = vmatprep.subr.mxu0 %v233_v21 }
  0x53   : > { %463 = vmatpush3.msra.mxu0 %v217_v22 }
  0x54   : > { %464 = vmatprep.subr.mxu0 %v232_v23 }
  0x55   : > { %465 = vmatpush3.msra.mxu0 %v216_v24 }
  0x56   : > { %466 = vmatprep.subr.mxu0 %v231_v25 }
  0x57   : > { %467 = vmatpush3.msra.mxu0 %v215_v26 }
  0x58   : > { %468 = vmatprep.subr.mxu0 %v230_v27 }
  0x59   : > { %469 = vmatpush3.msra.mxu0 %v214_v28 }
  0x5a   : > { %470 = vmatprep.subr.mxu0 %v229_v29 }
  0x5b   : > { %471 = vmatpush3.msra.mxu0 %v213_v30 }
  0x5c   : > { %472 = vmatprep.subr.mxu0 %v228_v31 }
  0x5d   : > { %473 = vmatpush3.msra.mxu0 %v212_v32 }
  0x5e   : > { %309 = vmatmul.mubr.f32.vlgmr.msra.gmra.mxu0 %v211_v33 }
 0x11e   : > { %v474_v34 = vpop.f32.mrf.mxu0 }
 0x120   : > { %v475_v35 = vpop.f32.mrf.mxu0 }
 0x121   : > { %v476_v36 = vadd.f32 %v475_v35, %v474_v34 }
 0x123   : > { %314 = vst [vmem:[%s208_s19] sm:$0xff] %v476_v36 }
 0x124   : > { %619 = shalt.err (!%p616_p5)
}
 0x125   : > { %s620_s29 = scalar_lea.hbm %s328_s24, 128  ;;  %s624_s6 = scalar_lea.hbm %s885_s2, 256 }
 0x126   : > { %p621_p7 = scmp.ne.s32.totalorder %s328_s24, %s620_s29  ;;  %p625_p9 = scmp.lt.s32.totalorder %s328_s24, %s885_s2 }
 0x127   : > { %p626_p11 = scmp.lt.s32.totalorder %s624_s6, %s620_s29 }
 0x128   : > { %p622_p6 = pnand %p621_p7, %p799_p13 }
 0x129   : > { %p627_p12 = por %p626_p11, %p625_p9 }
 0x12a   : > { %p623_p4 = pneg %p622_p6 }
 0x12c   : > { %p628_p1 = pnand %p627_p12, %p623_p4 }
 0x12e   : > { %631 = shalt.err (!%p628_p1)
}
 0x12f   : > { %483 = dma.vmem_to_hbm [thread:$0]  (%p799_p13), %s331_s21, 128, %s328_s24, %s316_s26  }
 0x130 PF: > { %s342_s8 = sand.u32 1, %s670_s9   ;;  %p897_p8 = scmp.ne.s32.totalorder %s890_s20, 0 }
 0x131   : > { %p898_p10 = scmp.ge.s32.totalorder %s690_s14, 2  ;;  %s343_s16 = scalar_lea.sflag [#allocation4], %s342_s8 }
 0x133   : > { %p494_p0 = pnand %p898_p10, %p897_p8 }
 0x135   : > { %p495_p2 = pneg %p494_p0 }
 0x137   : > { %665 = dma.done.wait (%p495_p2), %s343_s16, 128  }
 0x138   : > { %667 = vsyncadd (%p495_p2), %s343_s16, 4294967168  ;;  %s19_s14 = sadd.s32 1, %s690_s14   ;;  %s899_s9 = smov %s674_s10 }
 0x139   : > { %p16_p3 = scmp.ge.s32.totalorder %s19_s14, 4   ;;  %s900_s10 = smov %s678_s11 }
 0x13a   : > { %s901_s11 = smov %s808_s15  ;;  %s902_s12 = smov %s686_s13 }
 0x13b   : > { %s903_s13 = smov %s905_s25  ;;  %18 = sbr.rel (!%p16_p3) target bundleno = 7 (0x7), region = 78 }
 0x140   :  { %348 = vsyncpa [#allocation3], 1 }
 0x141   :  { %350 = vsyncpa [#allocation3 + $0x1], 1 }
 0x142   :  { %351 = vsyncpa [#allocation6], 1 }
 0x143   :  { %352 = vsyncpa [#allocation4], 1 }
 0x144   :  { %354 = vsyncpa [#allocation4 + $0x1], 1 }

</bundles_post_ra>
